<compile_context>
chip_gen: v5e
topology: v5e:2x2
jax: 0.10.0
libtpu: 0.0.40
codegen_flags: <defaults>
</compile_context>

<pallas_src>
import functools

import jax
import jax.numpy as jnp
import numpy as np
from jax.experimental import pallas as pl
from jax.experimental.pallas import tpu as pltpu

FPAD = 128  # lane-dense padded feature / hidden width


# ---------------------------------------------------------------------------
# Fused Pallas kernel: one grid step == one GIN layer (+ its pooled output)
# ---------------------------------------------------------------------------
def gin_fused_kernel(a_ref, x0_ref, p_ref,
                     w1_ref, w2_ref, vec_ref,
                     xn_ref, xg_ref, h_ref):
    """Aggregate + 2-layer MLP + ReLU + BatchNorm + fused global_add_pool.

    vec_ref packs the per-layer [1, FPAD] vectors as rows:
      row 0 = b1, row 1 = b2, row 2 = gamma, row 3 = beta (rows 4..7 are zero).
    """
    # Layer 0: load the (lane-padded) input features into the resident scratch.
    @pl.when(pl.program_id(0) == 0)
    def _():
        h_ref[...] = x0_ref[...]

    h = h_ref[...]

    b1 = vec_ref[0:1, :]
    b2 = vec_ref[1:2, :]
    gamma = vec_ref[2:3, :]
    beta = vec_ref[3:4, :]

    # Weighted neighbor aggregation (+ self-connection, folded into A_hat) on
    # the MXU: t = (A + I) @ h  ==  (1 + eps) * h + sum_j w_ij h_j  with eps=0.
    t = jnp.dot(a_ref[...], h, preferred_element_type=jnp.float32)

    # MLP: Linear -> ReLU -> Linear, then the outer F.relu from GIN.forward.
    t = jnp.dot(t, w1_ref[...], preferred_element_type=jnp.float32) + b1
    t = jnp.maximum(t, 0.0)
    t = jnp.dot(t, w2_ref[...], preferred_element_type=jnp.float32) + b2
    t = jnp.maximum(t, 0.0)

    # BatchNorm1d, training-mode statistics (biased variance, eps = 1e-5).
    # Fold gamma into the rsqrt scale so only one [N, FPAD] multiply remains.
    mean = jnp.mean(t, axis=0, keepdims=True)
    ctr = t - mean
    var = jnp.mean(ctr * ctr, axis=0, keepdims=True)
    scale = gamma * jax.lax.rsqrt(var + 1e-5)          # [1, FPAD] only
    out = ctr * scale + beta

    h_ref[...] = out          # running node features for the next layer
    xn_ref[...] = out         # lane-dense 128-wide block of the x_nodes slab

    # Fused global_add_pool: P is the [G, N] one-hot graph-membership matrix.
    xg_ref[...] = jnp.dot(p_ref[...], out, preferred_element_type=jnp.float32)


# ---------------------------------------------------------------------------
# Wrapper
# ---------------------------------------------------------------------------
def _pad2(a, rows, cols):
    return jnp.pad(a, ((0, rows - a.shape[0]), (0, cols - a.shape[1])))


@functools.partial(jax.jit, static_argnames=("num_nodes", "num_graphs", "dim"))
def gin_forward(x, edge_index, edge_weight, batch, params,
                *, num_nodes, num_graphs, dim):
    """Full GIN.forward: returns (x_g [G, dim*L], x_nodes [N, dim*L])."""
    N, G, L = num_nodes, num_graphs, len(params)

    # Glue: densify the graph (scatter -> dense adjacency / pooling matrix).
    # A_hat = A + I folds the GIN self-term into the aggregation matmul.
    src, dst = edge_index[0], edge_index[1]
    A = jnp.zeros((N, N), jnp.float32).at[dst, src].add(edge_weight)
    A_hat = A + jnp.eye(N, dtype=jnp.float32)
    P = jnp.zeros((G, N), jnp.float32).at[batch, jnp.arange(N)].set(1.0)

    # Pad the working width to 128 lanes and stack per-layer parameters so a
    # single fused pallas_call covers all layers (padding is zeros, which is
    # exactly propagated: padded lanes stay 0 through MLP/ReLU/BN/pool).
    x0 = _pad2(x.astype(jnp.float32), N, FPAD)
    W1 = jnp.stack([_pad2(p["W1"], FPAD, FPAD) for p in params])
    W2 = jnp.stack([_pad2(p["W2"], FPAD, FPAD) for p in params])
    # Pack the four [1, dim] per-layer vectors into one [L, 8, FPAD] tensor
    # (rows: b1, b2, gamma, beta, then zero padding to a full sublane tile).
    vecs = jnp.stack([
        _pad2(jnp.concatenate(
            [p["b1"], p["b2"], p["gamma"], p["beta"]], axis=0), 8, FPAD)
        for p in params])

    xn_slab, xg_slab = pl.pallas_call(
        gin_fused_kernel,
        out_shape=(jax.ShapeDtypeStruct((N, L * FPAD), jnp.float32),
                   jax.ShapeDtypeStruct((G, L * FPAD), jnp.float32)),
        grid_spec=pltpu.PrefetchScalarGridSpec(
            num_scalar_prefetch=0,
            grid=(L,),
            in_specs=[
                pl.BlockSpec((N, N), lambda l: (0, 0)),                 # A_hat (resident)
                pl.BlockSpec((N, FPAD), lambda l: (0, 0)),              # x0 (resident)
                pl.BlockSpec((G, N), lambda l: (0, 0)),                 # P (resident)
                pl.BlockSpec((None, FPAD, FPAD), lambda l: (l, 0, 0)),  # W1[l]
                pl.BlockSpec((None, FPAD, FPAD), lambda l: (l, 0, 0)),  # W2[l]
                pl.BlockSpec((None, 8, FPAD), lambda l: (l, 0, 0)),     # vecs[l]
            ],
            out_specs=[
                pl.BlockSpec((N, FPAD), lambda l: (0, l)),   # x_nodes slab block l
                pl.BlockSpec((G, FPAD), lambda l: (0, l)),   # x_g slab block l
            ],
            scratch_shapes=[pltpu.VMEM((N, FPAD), jnp.float32)],
        ),
        compiler_params=pltpu.CompilerParams(
            dimension_semantics=("arbitrary",)),   # layer axis is sequential
    )(A_hat, x0, P, W1, W2, vecs)

    # Slice the lane-padded slabs back to the real hidden width (plumbing only).
    x_nodes = xn_slab.reshape(N, L, FPAD)[:, :, :dim].reshape(N, L * dim)
    x_g = xg_slab.reshape(G, L, FPAD)[:, :, :dim].reshape(G, L * dim)
    return x_g, x_nodes


# ---------------------------------------------------------------------------
# Pure-JAX reference (for correctness check)
# ---------------------------------------------------------------------------
def gin_forward_ref(x, edge_index, edge_weight, batch, params,
                    num_nodes, num_graphs):
    src, dst = edge_index[0], edge_index[1]
    A = jnp.zeros((num_nodes, num_nodes), jnp.float32).at[dst, src].add(edge_weight)
    P = jnp.zeros((num_graphs, num_nodes), jnp.float32).at[
        batch, jnp.arange(num_nodes)].set(1.0)
    xs = []
    h = x
    for layer in params:
        agg = A @ h
        t = h + agg
        t = jnp.maximum(t @ layer["W1"] + layer["b1"], 0.0)
        t = t @ layer["W2"] + layer["b2"]
        t = jnp.maximum(t, 0.0)
        mean = jnp.mean(t, axis=0, keepdims=True)
        var = jnp.mean((t - mean) ** 2, axis=0, keepdims=True)
        h = layer["gamma"] * (t - mean) / jnp.sqrt(var + 1e-5) + layer["beta"]
        xs.append(h)
    x_nodes = jnp.concatenate(xs, axis=1)
    x_g = jnp.concatenate([P @ xi for xi in xs], axis=1)
    return x_g, x_nodes


# ---------------------------------------------------------------------------
# Main
# ---------------------------------------------------------------------------
if __name__ == "__main__":
    num_features = 16
    dim = 32
    num_gc_layers = 3
    N = 64            # nodes
    G = 4             # graphs
    E = 256           # edges

    key = jax.random.PRNGKey(0)
    keys = jax.random.split(key, 8 + 4 * num_gc_layers)
    kit = iter(keys)

    # Deterministic synthetic inputs.
    x = jax.random.normal(next(kit), (N, num_features), jnp.float32)
    src = jax.random.randint(next(kit), (E,), 0, N)
    dst = jax.random.randint(next(kit), (E,), 0, N)
    edge_index = jnp.stack([src, dst], axis=0)
    edge_weight = jax.random.uniform(next(kit), (E,), jnp.float32)
    batch = jnp.repeat(jnp.arange(G), N // G)          # [N], sorted graph ids

    # Deterministic parameters (weights stored [in, out]; biases/BN as [1, dim]).
    params = []
    for i in range(num_gc_layers):
        fin = num_features if i == 0 else dim
        W1 = jax.random.normal(next(kit), (fin, dim), jnp.float32) * (1.0 / np.sqrt(fin))
        W2 = jax.random.normal(next(kit), (dim, dim), jnp.float32) * (1.0 / np.sqrt(dim))
        b1 = jax.random.normal(next(kit), (1, dim), jnp.float32) * 0.1
        b2 = jax.random.normal(next(kit), (1, dim), jnp.float32) * 0.1
        params.append({
            "W1": W1, "b1": b1, "W2": W2, "b2": b2,
            "gamma": jnp.ones((1, dim), jnp.float32),
            "beta": jnp.zeros((1, dim), jnp.float32),
        })

    x_g, x_nodes = gin_forward(x, edge_index, edge_weight, batch, params,
                               num_nodes=N, num_graphs=G, dim=dim)
    jax.block_until_ready((x_g, x_nodes))

    assert x_g.shape == (G, dim * num_gc_layers)
    assert x_nodes.shape == (N, dim * num_gc_layers)

    # Correctness check against pure-JAX reference.
    x_g_ref, x_nodes_ref = gin_forward_ref(x, edge_index, edge_weight, batch,
                                           params, N, G)
    np.testing.assert_allclose(np.asarray(x_nodes), np.asarray(x_nodes_ref),
                               rtol=1e-4, atol=1e-4)
    np.testing.assert_allclose(np.asarray(x_g), np.asarray(x_g_ref),
                               rtol=1e-4, atol=1e-4)

    print("KERNEL_OK")
</pallas_src>

<mosaic_0001>
module attributes {stable_mosaic.version = 11 : i64} {
  func.func @gin_fused_kernel(%arg0: i32, %arg1: memref<64x64xf32, #tpu.memory_space<vmem>>, %arg2: memref<64x128xf32, #tpu.memory_space<vmem>>, %arg3: memref<4x64xf32, #tpu.memory_space<vmem>>, %arg4: memref<1x128x128xf32, #tpu.memory_space<vmem>>, %arg5: memref<1x128x128xf32, #tpu.memory_space<vmem>>, %arg6: memref<1x8x128xf32, #tpu.memory_space<vmem>>, %arg7: memref<64x128xf32, #tpu.memory_space<vmem>>, %arg8: memref<4x128xf32, #tpu.memory_space<vmem>>, %arg9: memref<64x128xf32, #tpu.memory_space<vmem>>) attributes {dimension_semantics = [#tpu.dimension_semantics<arbitrary>], iteration_bounds = array<i64: 3>, scalar_prefetch = 0 : i64, scratch_operands = 1 : i64, tpu.core_type = #tpu.core_type<tc>, window_params = [{pipeline_mode = #tpu.pipeline_mode<synchronous>, transform_indices = @transform_0, window_bounds = array<i64: 64, 64>}, {pipeline_mode = #tpu.pipeline_mode<synchronous>, transform_indices = @transform_1, window_bounds = array<i64: 64, 128>}, {pipeline_mode = #tpu.pipeline_mode<synchronous>, transform_indices = @transform_2, window_bounds = array<i64: 4, 64>}, {transform_indices = @transform_3, window_bounds = array<i64: 1, 128, 128>}, {transform_indices = @transform_4, window_bounds = array<i64: 1, 128, 128>}, {transform_indices = @transform_5, window_bounds = array<i64: 1, 8, 128>}, {transform_indices = @transform_6, window_bounds = array<i64: 64, 128>}, {transform_indices = @transform_7, window_bounds = array<i64: 4, 128>}]} {
    %c0_i32 = arith.constant 0 : i32
    %0 = arith.cmpi eq, %arg0, %c0_i32 : i32
    %1 = arith.extui %0 : i1 to i32
    %c0_i32_0 = arith.constant 0 : i32
    %2 = arith.cmpi ne, %1, %c0_i32_0 : i32
    scf.if %2 {
      %c0_37 = arith.constant 0 : index
      %c0_38 = arith.constant 0 : index
      %52 = vector.load %arg2[%c0_37, %c0_38] : memref<64x128xf32, #tpu.memory_space<vmem>>, vector<64x128xf32>
      %c0_39 = arith.constant 0 : index
      %c0_40 = arith.constant 0 : index
      %53 = vector.load %arg9[%c0_39, %c0_40] : memref<64x128xf32, #tpu.memory_space<vmem>>, vector<64x128xf32>
      tpu.vector_store %arg9[%c0_39, %c0_40], %52 {strides = array<i32>} : memref<64x128xf32, #tpu.memory_space<vmem>>, vector<64x128xf32>,
    } else {
    }
    %c0 = arith.constant 0 : index
    %c0_1 = arith.constant 0 : index
    %3 = vector.load %arg9[%c0, %c0_1] : memref<64x128xf32, #tpu.memory_space<vmem>>, vector<64x128xf32>
    %c0_2 = arith.constant 0 : index
    %c0_3 = arith.constant 0 : index
    %c0_4 = arith.constant 0 : index
    %4 = vector.load %arg6[%c0_2, %c0_3, %c0_4] : memref<1x8x128xf32, #tpu.memory_space<vmem>>, vector<1x1x128xf32>
    %5 = vector.shape_cast %4 : vector<1x1x128xf32> to vector<1x128xf32>
    %c0_5 = arith.constant 0 : index
    %c1 = arith.constant 1 : index
    %c0_6 = arith.constant 0 : index
    %6 = vector.load %arg6[%c0_5, %c1, %c0_6] : memref<1x8x128xf32, #tpu.memory_space<vmem>>, vector<1x1x128xf32>
    %7 = vector.shape_cast %6 : vector<1x1x128xf32> to vector<1x128xf32>
    %c0_7 = arith.constant 0 : index
    %c2 = arith.constant 2 : index
    %c0_8 = arith.constant 0 : index
    %8 = vector.load %arg6[%c0_7, %c2, %c0_8] : memref<1x8x128xf32, #tpu.memory_space<vmem>>, vector<1x1x128xf32>
    %9 = vector.shape_cast %8 : vector<1x1x128xf32> to vector<1x128xf32>
    %c0_9 = arith.constant 0 : index
    %c3 = arith.constant 3 : index
    %c0_10 = arith.constant 0 : index
    %10 = vector.load %arg6[%c0_9, %c3, %c0_10] : memref<1x8x128xf32, #tpu.memory_space<vmem>>, vector<1x1x128xf32>
    %11 = vector.shape_cast %10 : vector<1x1x128xf32> to vector<1x128xf32>
    %c0_11 = arith.constant 0 : index
    %c0_12 = arith.constant 0 : index
    %12 = vector.load %arg1[%c0_11, %c0_12] : memref<64x64xf32, #tpu.memory_space<vmem>>, vector<64x64xf32>
    %cst = arith.constant dense<0.000000e+00> : vector<64x128xf32>
    %13 = tpu.matmul %12, %3, %cst {dimension_numbers = #tpu.dot_dimension_numbers<[1], [0], [0], [1], [0, 0, 1, 1], [], []>} : vector<64x64xf32>, vector<64x128xf32>, vector<64x128xf32> -> vector<64x128xf32>
    %c0_13 = arith.constant 0 : index
    %c0_14 = arith.constant 0 : index
    %c0_15 = arith.constant 0 : index
    %14 = vector.load %arg4[%c0_13, %c0_14, %c0_15] : memref<1x128x128xf32, #tpu.memory_space<vmem>>, vector<1x128x128xf32>
    %15 = vector.shape_cast %14 : vector<1x128x128xf32> to vector<128x128xf32>
    %cst_16 = arith.constant dense<0.000000e+00> : vector<64x128xf32>
    %16 = tpu.matmul %13, %15, %cst_16 {dimension_numbers = #tpu.dot_dimension_numbers<[1], [0], [0], [1], [0, 0, 1, 1], [], []>} : vector<64x128xf32>, vector<128x128xf32>, vector<64x128xf32> -> vector<64x128xf32>
    %17 = vector.broadcast %5 : vector<1x128xf32> to vector<64x128xf32>
    %18 = arith.addf %16, %17 : vector<64x128xf32>
    %cst_17 = arith.constant 0.000000e+00 : f32
    %19 = vector.broadcast %cst_17 : f32 to vector<64x128xf32>
    %20 = arith.maximumf %18, %19 : vector<64x128xf32>
    %c0_18 = arith.constant 0 : index
    %c0_19 = arith.constant 0 : index
    %c0_20 = arith.constant 0 : index
    %21 = vector.load %arg5[%c0_18, %c0_19, %c0_20] : memref<1x128x128xf32, #tpu.memory_space<vmem>>, vector<1x128x128xf32>
    %22 = vector.shape_cast %21 : vector<1x128x128xf32> to vector<128x128xf32>
    %cst_21 = arith.constant dense<0.000000e+00> : vector<64x128xf32>
    %23 = tpu.matmul %20, %22, %cst_21 {dimension_numbers = #tpu.dot_dimension_numbers<[1], [0], [0], [1], [0, 0, 1, 1], [], []>} : vector<64x128xf32>, vector<128x128xf32>, vector<64x128xf32> -> vector<64x128xf32>
    %24 = vector.broadcast %7 : vector<1x128xf32> to vector<64x128xf32>
    %25 = arith.addf %23, %24 : vector<64x128xf32>
    %cst_22 = arith.constant 0.000000e+00 : f32
    %26 = vector.broadcast %cst_22 : f32 to vector<64x128xf32>
    %27 = arith.maximumf %25, %26 : vector<64x128xf32>
    %cst_23 = arith.constant dense<0.000000e+00> : vector<128xf32>
    %28 = vector.multi_reduction <add>, %27, %cst_23 [0] : vector<64x128xf32> to vector<128xf32>
    %29 = vector.shape_cast %28 : vector<128xf32> to vector<1x128xf32>
    %cst_24 = arith.constant 6.400000e+01 : f32
    %30 = vector.broadcast %cst_24 : f32 to vector<1x128xf32>
    %31 = arith.divf %29, %30 : vector<1x128xf32>
    %32 = vector.broadcast %31 : vector<1x128xf32> to vector<64x128xf32>
    %33 = arith.subf %27, %32 : vector<64x128xf32>
    %34 = arith.mulf %33, %33 : vector<64x128xf32>
    %cst_25 = arith.constant dense<0.000000e+00> : vector<128xf32>
    %35 = vector.multi_reduction <add>, %34, %cst_25 [0] : vector<64x128xf32> to vector<128xf32>
    %36 = vector.shape_cast %35 : vector<128xf32> to vector<1x128xf32>
    %cst_26 = arith.constant 6.400000e+01 : f32
    %37 = vector.broadcast %cst_26 : f32 to vector<1x128xf32>
    %38 = arith.divf %36, %37 : vector<1x128xf32>
    %cst_27 = arith.constant 9.99999974E-6 : f32
    %39 = vector.broadcast %cst_27 : f32 to vector<1x128xf32>
    %40 = arith.addf %38, %39 : vector<1x128xf32>
    %41 = math.rsqrt %40 : vector<1x128xf32>
    %42 = arith.mulf %9, %41 : vector<1x128xf32>
    %43 = vector.broadcast %42 : vector<1x128xf32> to vector<64x128xf32>
    %44 = arith.mulf %33, %43 : vector<64x128xf32>
    %45 = vector.broadcast %11 : vector<1x128xf32> to vector<64x128xf32>
    %46 = arith.addf %44, %45 : vector<64x128xf32>
    %c0_28 = arith.constant 0 : index
    %c0_29 = arith.constant 0 : index
    %47 = vector.load %arg9[%c0_28, %c0_29] : memref<64x128xf32, #tpu.memory_space<vmem>>, vector<64x128xf32>
    tpu.vector_store %arg9[%c0_28, %c0_29], %46 {strides = array<i32>} : memref<64x128xf32, #tpu.memory_space<vmem>>, vector<64x128xf32>,
    %c0_30 = arith.constant 0 : index
    %c0_31 = arith.constant 0 : index
    %48 = vector.load %arg7[%c0_30, %c0_31] : memref<64x128xf32, #tpu.memory_space<vmem>>, vector<64x128xf32>
    tpu.vector_store %arg7[%c0_30, %c0_31], %46 {strides = array<i32>} : memref<64x128xf32, #tpu.memory_space<vmem>>, vector<64x128xf32>,
    %c0_32 = arith.constant 0 : index
    %c0_33 = arith.constant 0 : index
    %49 = vector.load %arg3[%c0_32, %c0_33] : memref<4x64xf32, #tpu.memory_space<vmem>>, vector<4x64xf32>
    %cst_34 = arith.constant dense<0.000000e+00> : vector<4x128xf32>
    %50 = tpu.matmul %49, %46, %cst_34 {dimension_numbers = #tpu.dot_dimension_numbers<[1], [0], [0], [1], [0, 0, 1, 1], [], []>} : vector<4x64xf32>, vector<64x128xf32>, vector<4x128xf32> -> vector<4x128xf32>
    %c0_35 = arith.constant 0 : index
    %c0_36 = arith.constant 0 : index
    %51 = vector.load %arg8[%c0_35, %c0_36] : memref<4x128xf32, #tpu.memory_space<vmem>>, vector<4x128xf32>
    tpu.vector_store %arg8[%c0_35, %c0_36], %50 {strides = array<i32>} : memref<4x128xf32, #tpu.memory_space<vmem>>, vector<4x128xf32>,
    return
  }
  func.func @transform_0(%arg0: i32) -> (i32, i32) {
    %c0_i32 = arith.constant 0 : i32
    %c0_i32_0 = arith.constant 0 : i32
    %c0_i32_1 = arith.constant 0 : i32
    return %c0_i32, %c0_i32_0 : i32, i32
  }
  func.func @transform_1(%arg0: i32) -> (i32, i32) {
    %c0_i32 = arith.constant 0 : i32
    %c0_i32_0 = arith.constant 0 : i32
    %c0_i32_1 = arith.constant 0 : i32
    return %c0_i32, %c0_i32_0 : i32, i32
  }
  func.func @transform_2(%arg0: i32) -> (i32, i32) {
    %c0_i32 = arith.constant 0 : i32
    %c0_i32_0 = arith.constant 0 : i32
    %c0_i32_1 = arith.constant 0 : i32
    return %c0_i32, %c0_i32_0 : i32, i32
  }
  func.func @transform_3(%arg0: i32) -> (i32, i32, i32) {
    %c0_i32 = arith.constant 0 : i32
    %c0_i32_0 = arith.constant 0 : i32
    %c0_i32_1 = arith.constant 0 : i32
    return %arg0, %c0_i32, %c0_i32_0 : i32, i32, i32
  }
  func.func @transform_4(%arg0: i32) -> (i32, i32, i32) {
    %c0_i32 = arith.constant 0 : i32
    %c0_i32_0 = arith.constant 0 : i32
    %c0_i32_1 = arith.constant 0 : i32
    return %arg0, %c0_i32, %c0_i32_0 : i32, i32, i32
  }
  func.func @transform_5(%arg0: i32) -> (i32, i32, i32) {
    %c0_i32 = arith.constant 0 : i32
    %c0_i32_0 = arith.constant 0 : i32
    %c0_i32_1 = arith.constant 0 : i32
    return %arg0, %c0_i32, %c0_i32_0 : i32, i32, i32
  }
  func.func @transform_6(%arg0: i32) -> (i32, i32) {
    %c0_i32 = arith.constant 0 : i32
    %c0_i32_0 = arith.constant 0 : i32
    return %c0_i32, %arg0 : i32, i32
  }
  func.func @transform_7(%arg0: i32) -> (i32, i32) {
    %c0_i32 = arith.constant 0 : i32
    %c0_i32_0 = arith.constant 0 : i32
    return %c0_i32, %arg0 : i32, i32
  }
}

</mosaic_0001>

<bundles_post_ra>
// kernel: gin_forward.1
= control target key start
LH: loop header
LB: loop body
LE: loop exit
PB: predicated region body
PF: predicated region fallthrough
CT: control target
= control target key end

     0   :  { %s997_s24 = smov 0   ;;  %s999_s25 = smov 0   ;;  %s1187_s0 = inlined_call_operand.vmem [shape: f32[64,64], index: 0, kind: input, shape index: {}]   ;;  %s1188_s1 = inlined_call_operand.vmem [shape: f32[64,128], index: 1, kind: input, shape index: {}]   ;;  %s1189_s2 = inlined_call_operand.vmem [shape: f32[4,64], index: 2, kind: input, shape index: {}]   ;;  %s1190_s3 = inlined_call_operand.vmem [shape: f32[3,128,128], index: 3, kind: input, shape index: {}]   ;;  %s1191_s4 = inlined_call_operand.vmem [shape: f32[3,128,128], index: 4, kind: input, shape index: {}]   ;;  %s1192_s5 = inlined_call_operand.vmem [shape: f32[3,8,128], index: 5, kind: input, shape index: {}]   ;;  %s1193_s6 = inlined_call_operand.vmem [shape: f32[64,384], index: 6, kind: output, shape index: {0}]   ;;  %s1194_s7 = inlined_call_operand.vmem [shape: f32[4,384], index: 7, kind: output, shape index: {1}]  }
   0x1   :  { %s1001_s26 = smov 0  }
   0x2 LB: > { %s1008_s27 = sadd.s32 4294967295, %s954_s26   ;;  %s1010_s28 = sadd.s32 1, %s954_s26   ;;  %s954_s26 = sphi %s1001_s26, %s1198_s26   ;;  %s950_s25 = sphi %s999_s25, %s1197_s25   ;;  %s946_s24 = sphi %s997_s24, %s1196_s24  }
   0x3   : > { %s163_s29 = ssub.s32 %s954_s26, %s1010_s28  ;;  %s166_s30 = sadd.s32 1, %s950_s25 }
   0x4   : > { %p164_p0 = scmp.eq.s32.totalorder %s163_s29, 0  ;;  %p176_p1 = scmp.ne.s32.totalorder %s950_s25, %s946_s24 }
   0x5   : > { %p177_p2 = scmp.eq.s32.totalorder %s1008_s27, 2  ;;  %p860_p3 = scmp.ge.s32.totalorder %s954_s26, 1 }
   0x6   : > { %s1017_s8 = scalar_select %p164_p0, %s950_s25, %s166_s30  }
   0x7   : > { %p1019_p4 = por %p177_p2, %p176_p1  ;;  %p259_p5 = scmp.lt.s32.totalorder %s954_s26, 4 }
   0x9   : > { %p260_p6 = pnand %p860_p3, %p259_p5 }
   0xa   : > { %s294_s10 = sand.u32 (!%p260_p6), 1, %s946_s24   ;;  %p303_p7 = scmp.lt.s32.totalorder (!%p260_p6), %s1008_s27, 2 }
   0xb   : > { %263 = sbr.rel (%p260_p6) target bundleno = 731 (0x2db), region = 44  ;;  %s861_s11 = sshll.u32 (!%p260_p6), %s294_s10, 6 }
   0xc   : > { %s1045_s10 = scalar_lea.vmem (!%p260_p6), [#allocation3], %s861_s11  ;;  %p868_p8 = scmp.ne.s32.totalorder (!%p260_p6), %s1008_s27, 0 }
  0x10   : > { %s304_s12 = scalar_select %p303_p7, %s1008_s27, 2 }
  0x11   : > { %324 = sbr.rel (%p868_p8) target bundleno = 31 (0x1f), region = 48 }
  0x12   : > { %s882_s13 = sshll.u32 %s304_s12, 7  ;;  %s866_s14 = sshll.u32 %s304_s12, 3 }
  0x13   : > { %s1028_s17 = scalar_lea.vmem %s1190_s3, %s882_s13  ;;  %s1033_s20 = scalar_lea.vmem %s1191_s4, %s882_s13 }
  0x14   : > { %s1038_s23 = scalar_lea.vmem %s1192_s5, %s866_s14  ;;  %s867_s24 = sshll.u32 %s304_s12, 2 }
  0x15   : > { %s1043_s30 = scalar_lea.vmem %s1194_s7, %s867_s24 }
  0x16   : > { %v325_v0 = vld [vmem:[%s1188_s1] sm:$0xff]  ;;  %v326_v1 = vld [vmem:[%s1188_s1 + $0x8] sm:$0xff]  ;;  %v327_v2 = vld [vmem:[%s1188_s1 + $0x10] sm:$0xff] }
  0x17   : > { %333 = vst [vmem:[#allocation2 + $0x30] sm:$0xff] %v325_v0  ;;  %v328_v3 = vld [vmem:[%s1188_s1 + $0x18] sm:$0xff]  ;;  %v329_v4 = vld [vmem:[%s1188_s1 + $0x20] sm:$0xff]  ;;  %v330_v5 = vld [vmem:[%s1188_s1 + $0x28] sm:$0xff] }
  0x18   : > { %334 = vst [vmem:[#allocation2] sm:$0xff] %v326_v1  ;;  %v331_v6 = vld [vmem:[%s1188_s1 + $0x30] sm:$0xff]  ;;  %v332_v7 = vld [vmem:[%s1188_s1 + $0x38] sm:$0xff] }
  0x19   : > { %335 = vst [vmem:[#allocation2 + $0x18] sm:$0xff] %v327_v2 }
  0x1a   : > { %336 = vst [vmem:[#allocation2 + $0x10] sm:$0xff] %v328_v3 }
  0x1b   : > { %337 = vst [vmem:[#allocation2 + $0x8] sm:$0xff] %v329_v4 }
  0x1c   : > { %338 = vst [vmem:[#allocation2 + $0x20] sm:$0xff] %v330_v5 }
  0x1d   : > { %339 = vst [vmem:[#allocation2 + $0x28] sm:$0xff] %v331_v6 }
  0x1e   : > { %340 = vst [vmem:[#allocation2 + $0x38] sm:$0xff] %v332_v7 }
  0x1f PF: > { %v342_v14 = vld [vmem:[#allocation2] sm:$0xff]  ;;  %v341_v15 = vld [vmem:[#allocation2 + $0x30] sm:$0xff]  ;;  %vm361_vm0 = vcmask 523264   ;;  %v354_v17 = vld [vmem:[%s1187_s0 + $0x8] sm:$0xff] }
  0x20   : > { %v343_v13 = vld [vmem:[#allocation2 + $0x18] sm:$0xff]  ;;  %v353_v16 = vld [vmem:[%s1187_s0] sm:$0xff]  ;;  %v355_v18 = vld [vmem:[%s1187_s0 + $0x10] sm:$0xff] }
  0x21   : > { %v344_v12 = vld [vmem:[#allocation2 + $0x10] sm:$0xff]  ;;  %v356_v19 = vld [vmem:[%s1187_s0 + $0x18] sm:$0xff]  ;;  %v440_v22 = vld [vmem:[%s1028_s17 + $0x68] sm:$0xff] }
  0x22   : > { %v345_v11 = vld [vmem:[#allocation2 + $0x8] sm:$0xff]  ;;  %v442_v20 = vld [vmem:[%s1028_s17 + $0x78] sm:$0xff]  ;;  %v441_v21 = vld [vmem:[%s1028_s17 + $0x70] sm:$0xff] }
  0x23   : > { %v346_v10 = vld [vmem:[#allocation2 + $0x20] sm:$0xff]  ;;  %444 = vmatpush.msra.mxu1 %v442_v20  ;;  %884 = vmatpush.msra.mxu3 %v442_v20  ;;  %v438_v25 = vld [vmem:[%s1028_s17 + $0x58] sm:$0xff]  ;;  %v437_v26 = vld [vmem:[%s1028_s17 + $0x50] sm:$0xff] }
  0x24   : > { %v347_v9 = vld [vmem:[#allocation2 + $0x28] sm:$0xff]  ;;  %v439_v23 = vld [vmem:[%s1028_s17 + $0x60] sm:$0xff]  ;;  %v434_v30 = vld [vmem:[%s1028_s17 + $0x38] sm:$0xff] }
  0x25   : > { %v348_v8 = vld [vmem:[#allocation2 + $0x38] sm:$0xff]  ;;  %445 = vmatpush.msra.mxu1 %v441_v21  ;;  %885 = vmatpush.msra.mxu3 %v441_v21  ;;  %v357_v24 = vld [vmem:[%s1187_s0 + $0x20] sm:$0xff]  ;;  %v436_v27 = vld [vmem:[%s1028_s17 + $0x48] sm:$0xff] }
  0x26   : > { %394 = vmatpush.msra.mxu0 %v348_v8  ;;  %v435_v28 = vld [vmem:[%s1028_s17 + $0x40] sm:$0xff]  ;;  %v358_v29 = vld [vmem:[%s1187_s0 + $0x28] sm:$0xff]  ;;  %v433_v31 = vld [vmem:[%s1028_s17 + $0x30] sm:$0xff] }
  0x27   : > { %446 = vmatpush.msra.mxu1 %v440_v22  ;;  %886 = vmatpush.msra.mxu3 %v440_v22  ;;  %v432_v32 = vld [vmem:[%s1028_s17 + $0x28] sm:$0xff]  ;;  %v431_v33 = vld [vmem:[%s1028_s17 + $0x20] sm:$0xff]  ;;  %v359_v34 = vld [vmem:[%s1187_s0 + $0x30] sm:$0xff] }
  0x28   : > { %395 = vmatpush.msra.mxu0 %v347_v9  ;;  %v430_v35 = vld [vmem:[%s1028_s17 + $0x18] sm:$0xff]  ;;  %v429_v36 = vld [vmem:[%s1028_s17 + $0x10] sm:$0xff]  ;;  %v428_v37 = vld [vmem:[%s1028_s17 + $0x8] sm:$0xff] }
  0x29   : > { %447 = vmatpush.msra.mxu1 %v439_v23  ;;  %887 = vmatpush.msra.mxu3 %v439_v23  ;;  %v360_v38 = vld [vmem:[%s1187_s0 + $0x38] sm:$0xff]  ;;  %v427_v39 = vld [vmem:[%s1028_s17] sm:$0xff]  ;;  %v507_v45 = vld [vmem:[%s1033_s20 + $0x70] sm:$0xff] }
  0x2a   : > { %396 = vmatpush.msra.mxu0 %v346_v10  ;;  %v508_v44 = vld [vmem:[%s1033_s20 + $0x78] sm:$0xff]  ;;  %v506_v46 = vld [vmem:[%s1033_s20 + $0x68] sm:$0xff]  ;;  %v505_v47 = vld [vmem:[%s1033_s20 + $0x60] sm:$0xff] }
  0x2b   : > { %448 = vmatpush.msra.mxu1 %v438_v25  ;;  %888 = vmatpush.msra.mxu3 %v438_v25  ;;  %v504_v48 = vld [vmem:[%s1033_s20 + $0x58] sm:$0xff]  ;;  %v503_v50 = vld [vmem:[%s1033_s20 + $0x50] sm:$0xff]  ;;  %v502_v51 = vld [vmem:[%s1033_s20 + $0x48] sm:$0xff] }
  0x2c   : > { %397 = vmatpush.msra.mxu0 %v345_v11  ;;  %510 = vmatpush.msra.mxu2 %v508_v44  ;;  %v501_v52 = vld [vmem:[%s1033_s20 + $0x40] sm:$0xff]  ;;  %v500_v53 = vld [vmem:[%s1033_s20 + $0x38] sm:$0xff]  ;;  %v499_v55 = vld [vmem:[%s1033_s20 + $0x30] sm:$0xff] }
  0x2d   : > { %449 = vmatpush.msra.mxu1 %v437_v26  ;;  %889 = vmatpush.msra.mxu3 %v437_v26  ;;  %v498_v56 = vld [vmem:[%s1033_s20 + $0x28] sm:$0xff]  ;;  %v497_v57 = vld [vmem:[%s1033_s20 + $0x20] sm:$0xff]  ;;  %v496_v58 = vld [vmem:[%s1033_s20 + $0x18] sm:$0xff] }
  0x2e   : > { %398 = vmatpush.msra.mxu0 %v344_v12  ;;  %511 = vmatpush.msra.mxu2 %v507_v45  ;;  %v495_v61 = vld [vmem:[%s1033_s20 + $0x10] sm:$0xff]  ;;  %v494_v62 = vld [vmem:[%s1033_s20 + $0x8] sm:$0xff]  ;;  %v493_v63 = vld [vmem:[%s1033_s20] sm:$0xff] }
  0x2f   : > { %450 = vmatpush.msra.mxu1 %v436_v27  ;;  %890 = vmatpush.msra.mxu3 %v436_v27  ;;  %v925_v0 = vld [vmem:[%s1038_s23] ss:$0 sm:$0xff] }
  0x30   : > { %399 = vmatpush.msra.mxu0 %v343_v13  ;;  %512 = vmatpush.msra.mxu2 %v506_v46 }
  0x31   : > { %451 = vmatpush.msra.mxu1 %v435_v28  ;;  %891 = vmatpush.msra.mxu3 %v435_v28 }
  0x32   : > { %400 = vmatpush.msra.mxu0 %v342_v14  ;;  %513 = vmatpush.msra.mxu2 %v505_v47 }
  0x33   : > { %452 = vmatpush.msra.mxu1 %v434_v30  ;;  %892 = vmatpush.msra.mxu3 %v434_v30  ;;  %v926_v30 = vld [vmem:[%s1038_s23 + $0x1] ss:$0 sm:$0xff] }
  0x34   : > { %401 = vmatpush.msra.mxu0 %v341_v15  ;;  %514 = vmatpush.msra.mxu2 %v504_v48 }
  0x35   : > { %869 = vmatmul.msk.f32.vlgmr.msra.gmra.mxu0 %vm361_vm0, %v353_v16  ;;  %453 = vmatpush.msra.mxu1 %v433_v31 }
  0x36   : > { %893 = vmatpush.msra.mxu3 %v433_v31  ;;  %515 = vmatpush.msra.mxu2 %v503_v50 }
  0x37   : > { %454 = vmatpush.msra.mxu1 %v432_v32 }
  0x38   : > { %894 = vmatpush.msra.mxu3 %v432_v32  ;;  %516 = vmatpush.msra.mxu2 %v502_v51 }
  0x39   : > { %455 = vmatpush.msra.mxu1 %v431_v33 }
  0x3a   : > { %895 = vmatpush.msra.mxu3 %v431_v33  ;;  %517 = vmatpush.msra.mxu2 %v501_v52 }
  0x3b   : > { %456 = vmatpush.msra.mxu1 %v430_v35 }
  0x3c   : > { %896 = vmatpush.msra.mxu3 %v430_v35  ;;  %518 = vmatpush.msra.mxu2 %v500_v53 }
  0x3d   : > { %870 = vmatmul.msk.f32.gmra.mxu0 %vm361_vm0, %v354_v17  ;;  %457 = vmatpush.msra.mxu1 %v429_v36 }
  0x3e   : > { %897 = vmatpush.msra.mxu3 %v429_v36  ;;  %519 = vmatpush.msra.mxu2 %v499_v55 }
  0x3f   : > { %458 = vmatpush.msra.mxu1 %v428_v37 }
  0x40   : > { %898 = vmatpush.msra.mxu3 %v428_v37  ;;  %520 = vmatpush.msra.mxu2 %v498_v56 }
  0x41   : > { %459 = vmatpush.msra.mxu1 %v427_v39 }
  0x42   : > { %899 = vmatpush.msra.mxu3 %v427_v39  ;;  %521 = vmatpush.msra.mxu2 %v497_v57 }
  0x44   : > { %522 = vmatpush.msra.mxu2 %v496_v58 }
  0x45   : > { %871 = vmatmul.msk.f32.gmra.mxu0 %vm361_vm0, %v355_v18 }
  0x46   : > { %523 = vmatpush.msra.mxu2 %v495_v61 }
  0x48   : > { %524 = vmatpush.msra.mxu2 %v494_v62 }
  0x4a   : > { %525 = vmatpush.msra.mxu2 %v493_v63 }
  0x4d   : > { %872 = vmatmul.msk.f32.gmra.mxu0 %vm361_vm0, %v356_v19 }
  0x55   : > { %873 = vmatmul.msk.f32.gmra.mxu0 %vm361_vm0, %v357_v24 }
  0x5d   : > { %874 = vmatmul.msk.f32.gmra.mxu0 %vm361_vm0, %v358_v29 }
  0x65   : > { %875 = vmatmul.msk.f32.gmra.mxu0 %vm361_vm0, %v359_v34 }
  0x6d   : > { %876 = vmatmul.msk.f32.gmra.mxu0 %vm361_vm0, %v360_v38 }
  0xb2   : > { %v403_v40 = vpop.f32.mrf.mxu0 }
  0xb3   : > { %460 = vmatmul.f32.vlgmr.msra.gmra.mxu1 %v403_v40  ;;  %v956_v40 = vmov 64.0  }
  0xb4   : > { %928 = vrcp.f32 %v956_v40 }
  0xba   : > { %v406_v41 = vpop.f32.mrf.mxu0  ;;  %v929_v48 = vpop.eup %928 }
  0xbb   : > { %463 = vmatmul.f32.gmra.mxu1 %v406_v41  ;;  %vm577_vm1 = vweird.f32 %v929_v48 }
  0xc2   : > { %v409_v42 = vpop.f32.mrf.mxu0 }
  0xc3   : > { %466 = vmatmul.f32.gmra.mxu1 %v409_v42 }
  0xca   : > { %v412_v43 = vpop.f32.mrf.mxu0 }
  0xcb   : > { %469 = vmatmul.f32.gmra.mxu1 %v412_v43 }
  0xd2   : > { %v415_v49 = vpop.f32.mrf.mxu0 }
  0xd3   : > { %472 = vmatmul.f32.gmra.mxu1 %v415_v49 }
  0xda   : > { %v418_v54 = vpop.f32.mrf.mxu0 }
  0xdb   : > { %475 = vmatmul.f32.gmra.mxu1 %v418_v54  ;;  %v573_v54 = vmul.f32 64.0, %v929_v48 }
  0xe2   : > { %v421_v59 = vpop.f32.mrf.mxu0 }
  0xe3   : > { %478 = vmatmul.f32.vlgmr.msra.gmra.mxu3 %v421_v59  ;;  %v574_v59 = vsub.f32 1.0, %v573_v54 }
  0xe5   : > { %v575_v62 = vmul.f32 %v929_v48, %v574_v59 }
  0xea   : > { %v424_v60 = vpop.f32.mrf.mxu0 }
  0xeb   : > { %481 = vmatmul.f32.gmra.mxu3 %v424_v60 }
 0x130   : > { %v461_v1 = vpop.f32.mrf.mxu1 }
 0x131   : > { %v462_v2 = vadd.f32 %v925_v0, %v461_v1  ;;  %v576_v1 = vadd.f32 %v929_v48, %v575_v62 }
 0x133   : > { %v485_v3 = vmax.f32 %v462_v2, 0.0 }
 0x135   : > { %526 = vmatmul.f32.vlgmr.msra.gmra.mxu2 %v485_v3 }
 0x138   : > { %v464_v4 = vpop.f32.mrf.mxu1 }
 0x139   : > { %v465_v5 = vadd.f32 %v925_v0, %v464_v4  ;;  %v578_v4 = vsel %vm577_vm1, %v929_v48, %v576_v1  ;;  %v927_v48 = vld [vmem:[%s1038_s23 + $0x3] ss:$0 sm:$0xff] }
 0x13a   : > { %v656_v1 = vld [vmem:[%s1189_s2] sm:$0xf] }
 0x13b   : > { %v486_v6 = vmax.f32 %v465_v5, 0.0 }
 0x13d   : > { %529 = vmatmul.f32.gmra.mxu2 %v486_v6 }
 0x140   : > { %v467_v7 = vpop.f32.mrf.mxu1 }
 0x141   : > { %v468_v8 = vadd.f32 %v925_v0, %v467_v7 }
 0x143   : > { %v487_v9 = vmax.f32 %v468_v8, 0.0 }
 0x145   : > { %532 = vmatmul.f32.gmra.mxu2 %v487_v9 }
 0x148   : > { %v470_v10 = vpop.f32.mrf.mxu1 }
 0x149   : > { %v471_v11 = vadd.f32 %v925_v0, %v470_v10 }
 0x14b   : > { %v488_v12 = vmax.f32 %v471_v11, 0.0 }
 0x14d   : > { %535 = vmatmul.f32.gmra.mxu2 %v488_v12 }
 0x150   : > { %v473_v13 = vpop.f32.mrf.mxu1 }
 0x151   : > { %v474_v14 = vadd.f32 %v925_v0, %v473_v13 }
 0x153   : > { %v489_v15 = vmax.f32 %v474_v14, 0.0 }
 0x155   : > { %538 = vmatmul.f32.gmra.mxu2 %v489_v15 }
 0x158   : > { %v476_v16 = vpop.f32.mrf.mxu1 }
 0x159   : > { %v477_v17 = vadd.f32 %v925_v0, %v476_v16 }
 0x15b   : > { %v490_v18 = vmax.f32 %v477_v17, 0.0 }
 0x15d   : > { %541 = vmatmul.f32.gmra.mxu2 %v490_v18 }
 0x166   : > { %v479_v19 = vpop.f32.mrf.mxu3 }
 0x167   : > { %v480_v20 = vadd.f32 %v925_v0, %v479_v19 }
 0x169   : > { %v491_v21 = vmax.f32 %v480_v20, 0.0 }
 0x16b   : > { %544 = vmatmul.f32.gmra.mxu2 %v491_v21 }
 0x16e   : > { %v482_v22 = vpop.f32.mrf.mxu3 }
 0x16f   : > { %v483_v23 = vadd.f32 %v925_v0, %v482_v22 }
 0x171   : > { %v492_v24 = vmax.f32 %v483_v23, 0.0 }
 0x173   : > { %547 = vmatmul.f32.gmra.mxu2 %v492_v24 }
 0x1b8   : > { %v527_v25 = vpop.f32.mrf.mxu2 }
 0x1b9   : > { %v528_v33 = vadd.f32 %v926_v30, %v527_v25 }
 0x1bb   : > { %v551_v37 = vmax.f32 %v528_v33, 0.0 }
 0x1c0   : > { %v530_v26 = vpop.f32.mrf.mxu2 }
 0x1c1   : > { %v531_v32 = vadd.f32 %v926_v30, %v530_v26 }
 0x1c3   : > { %v552_v35 = vmax.f32 %v531_v32, 0.0 }
 0x1c5   : > { %v559_v42 = vadd.f32 %v552_v35, %v551_v37 }
 0x1c8   : > { %v533_v27 = vpop.f32.mrf.mxu2 }
 0x1c9   : > { %v534_v34 = vadd.f32 %v926_v30, %v533_v27 }
 0x1cb   : > { %v553_v38 = vmax.f32 %v534_v34, 0.0 }
 0x1cd   : > { %v560_v45 = vadd.f32 %v559_v42, %v553_v38 }
 0x1d0   : > { %v536_v28 = vpop.f32.mrf.mxu2 }
 0x1d1   : > { %v537_v36 = vadd.f32 %v926_v30, %v536_v28 }
 0x1d3   : > { %v554_v43 = vmax.f32 %v537_v36, 0.0 }
 0x1d5   : > { %v561_v49 = vadd.f32 %v560_v45, %v554_v43 }
 0x1d8   : > { %v539_v29 = vpop.f32.mrf.mxu2 }
 0x1d9   : > { %v540_v39 = vadd.f32 %v926_v30, %v539_v29 }
 0x1db   : > { %v555_v46 = vmax.f32 %v540_v39, 0.0 }
 0x1dd   : > { %v562_v51 = vadd.f32 %v561_v49, %v555_v46 }
 0x1e0   : > { %v542_v31 = vpop.f32.mrf.mxu2 }
 0x1e1   : > { %v543_v44 = vadd.f32 %v926_v30, %v542_v31 }
 0x1e3   : > { %v556_v50 = vmax.f32 %v543_v44, 0.0 }
 0x1e5   : > { %v563_v55 = vadd.f32 %v562_v51, %v556_v50 }
 0x1ee   : > { %v545_v41 = vpop.f32.mrf.mxu2 }
 0x1ef   : > { %v546_v47 = vadd.f32 %v926_v30, %v545_v41 }
 0x1f1   : > { %v557_v52 = vmax.f32 %v546_v47, 0.0 }
 0x1f3   : > { %v564_v57 = vadd.f32 %v563_v55, %v557_v52 }
 0x1f6   : > { %v548_v53 = vpop.f32.mrf.mxu2 }
 0x1f7   : > { %v549_v56 = vadd.f32 %v926_v30, %v548_v53 }
 0x1f9   : > { %v558_v58 = vmax.f32 %v549_v56, 0.0 }
 0x1fb   : > { %v565_v60 = vadd.f32 %v564_v57, %v558_v58 }
 0x1fd   : > { %v566_v61 = vrot.slane %v565_v60, 4 }
 0x1ff   : > { %v567_v63 = vadd.f32 %v566_v61, %v565_v60 }
 0x201   : > { %v568_v0 = vrot.slane %v567_v63, 2 }
 0x203   : > { %v569_v2 = vadd.f32 %v568_v0, %v567_v63 }
 0x205   : > { %v570_v3 = vrot.slane %v569_v2, 1 }
 0x207   : > { %v571_v5 = vadd.f32 %v570_v3, %v569_v2 }
 0x209   : > { %v579_v6 = vmul.f32 %v578_v4, %v571_v5 }
 0x20b   : > { %v1138_v7 = vsub.f32 %v551_v37, %v579_v6  ;;  %v1140_v8 = vsub.f32 %v552_v35, %v579_v6  ;;  %v582_v9 = vsub.f32 %v553_v38, %v579_v6  ;;  %v583_v10 = vsub.f32 %v554_v43, %v579_v6  ;;  %v351_v43 = vld [vmem:[%s1038_s23 + $0x2] sm:$0x1]  ;;  %s879_s23 = sshll.u32 (%p1019_p4), %s1008_s27, 3 }
 0x20c   : > { %v584_v13 = vsub.f32 %v555_v46, %v579_v6  ;;  %v585_v16 = vsub.f32 %v556_v50, %v579_v6  ;;  %v586_v19 = vsub.f32 %v557_v52, %v579_v6  ;;  %v587_v22 = vsub.f32 %v558_v58, %v579_v6  ;;  %s693_s11 = scalar_lea.vmem (%p1019_p4), %s1193_s6, %s879_s23 }
 0x20d   : > { %v588_v11 = vmul.f32 %v1138_v7, %v1138_v7  ;;  %v589_v12 = vmul.f32 %v1140_v8, %v1140_v8  ;;  %v590_v14 = vmul.f32 %v582_v9, %v582_v9  ;;  %v591_v17 = vmul.f32 %v583_v10, %v583_v10 }
 0x20e   : > { %v592_v20 = vmul.f32 %v584_v13, %v584_v13  ;;  %v593_v23 = vmul.f32 %v585_v16, %v585_v16  ;;  %v594_v25 = vmul.f32 %v586_v19, %v586_v19  ;;  %v595_v27 = vmul.f32 %v587_v22, %v587_v22 }
 0x20f   : > { %v596_v15 = vadd.f32 %v589_v12, %v588_v11 }
 0x211   : > { %v597_v18 = vadd.f32 %v596_v15, %v590_v14 }
 0x213   : > { %v598_v21 = vadd.f32 %v597_v18, %v591_v17 }
 0x215   : > { %v599_v24 = vadd.f32 %v598_v21, %v592_v20 }
 0x217   : > { %v600_v26 = vadd.f32 %v599_v24, %v593_v23 }
 0x219   : > { %v601_v28 = vadd.f32 %v600_v26, %v594_v25 }
 0x21b   : > { %v602_v29 = vadd.f32 %v601_v28, %v595_v27 }
 0x21d   : > { %v603_v30 = vrot.slane %v602_v29, 4 }
 0x21f   : > { %v604_v31 = vadd.f32 %v603_v30, %v602_v29 }
 0x221   : > { %v605_v32 = vrot.slane %v604_v31, 2 }
 0x223   : > { %v606_v33 = vadd.f32 %v605_v32, %v604_v31 }
 0x225   : > { %v607_v34 = vrot.slane %v606_v33, 1 }
 0x227   : > { %v608_v35 = vadd.f32 %v607_v34, %v606_v33 }
 0x229   : > { %v609_v36 = vmul.f32 %v608_v35, %v578_v4 }
 0x22b   : > { %v610_v37 = vadd.f32 1e-05, %v609_v36 }
 0x22d   : > { %930 = vrsqrt.f32 %v610_v37  ;;  %vm617_vm3 = vweird.f32 %v610_v37 }
 0x233   : > { %v931_v38 = vpop.eup %930 }
 0x234   : > { %v612_v39 = vmul.f32 %v931_v38, %v610_v37  ;;  %vm618_vm2 = vweird.f32 %v931_v38 }
 0x235   : > { %vm619_vm4 = vmor %vm617_vm3, %vm618_vm2 }
 0x236   : > { %v613_v40 = vmul.f32 %v931_v38, %v612_v39 }
 0x238   : > { %v614_v41 = vmul.f32 0.5, %v613_v40 }
 0x23a   : > { %v615_v42 = vsub.f32 1.5, %v614_v41 }
 0x23c   : > { %v616_v44 = vmul.f32 %v931_v38, %v615_v42 }
 0x23e   : > { %v620_v45 = vsel %vm619_vm4, %v931_v38, %v616_v44 }
 0x23f   : > { %v621_v46 = vmul.f32 %v620_v45, %v351_v43 }
 0x241   : > { %v622_v47 = vperm.slane %v621_v46, 0 }
 0x243   : > { %v630_v49 = vmul.f32 %v622_v47, %v587_v22  ;;  %v629_v50 = vmul.f32 %v622_v47, %v586_v19  ;;  %v628_v51 = vmul.f32 %v622_v47, %v585_v16  ;;  %v627_v54 = vmul.f32 %v622_v47, %v584_v13 }
 0x244   : > { %v626_v56 = vmul.f32 %v622_v47, %v583_v10  ;;  %v625_v58 = vmul.f32 %v622_v47, %v582_v9  ;;  %v624_v60 = vmul.f32 %v622_v47, %v1140_v8  ;;  %v623_v62 = vmul.f32 %v622_v47, %v1138_v7 }
 0x245   : > { %v639_v52 = vadd.f32 %v927_v48, %v630_v49  ;;  %v638_v53 = vadd.f32 %v927_v48, %v629_v50  ;;  %v637_v55 = vadd.f32 %v927_v48, %v628_v51  ;;  %v636_v57 = vadd.f32 %v927_v48, %v627_v54 }
 0x246   : > { %v635_v59 = vadd.f32 %v927_v48, %v626_v56  ;;  %v634_v61 = vadd.f32 %v927_v48, %v625_v58  ;;  %v633_v63 = vadd.f32 %v927_v48, %v624_v60  ;;  %v632_v0 = vadd.f32 %v927_v48, %v623_v62 }
 0x247   : > { %647 = vst [vmem:[#allocation2 + $0x38] sm:$0xff] %v639_v52  ;;  %668 = vmatpush.msrb.mxu3 %v639_v52 }
 0x248   : > { %655 = vst [vmem:[%s1045_s10 + $0x38] sm:$0xff] %v639_v52 }
 0x249   : > { %646 = vst [vmem:[#allocation2 + $0x28] sm:$0xff] %v638_v53  ;;  %669 = vmatpush.msrb.mxu3 %v638_v53 }
 0x24a   : > { %654 = vst [vmem:[%s1045_s10 + $0x30] sm:$0xff] %v638_v53 }
 0x24b   : > { %645 = vst [vmem:[#allocation2 + $0x20] sm:$0xff] %v637_v55  ;;  %670 = vmatpush.msrb.mxu3 %v637_v55 }
 0x24c   : > { %653 = vst [vmem:[%s1045_s10 + $0x28] sm:$0xff] %v637_v55 }
 0x24d   : > { %644 = vst [vmem:[#allocation2 + $0x8] sm:$0xff] %v636_v57  ;;  %671 = vmatpush.msrb.mxu3 %v636_v57 }
 0x24e   : > { %652 = vst [vmem:[%s1045_s10 + $0x20] sm:$0xff] %v636_v57 }
 0x24f   : > { %643 = vst [vmem:[#allocation2 + $0x10] sm:$0xff] %v635_v59  ;;  %672 = vmatpush.msrb.mxu3 %v635_v59  ;;  %v750_v10 = vld [vmem:[%s1045_s10 + $0x38] sm:$0xff] (%p1019_p4) }
 0x250   : > { %651 = vst [vmem:[%s1045_s10 + $0x18] sm:$0xff] %v635_v59 }
 0x251   : > { %642 = vst [vmem:[#allocation2 + $0x18] sm:$0xff] %v634_v61  ;;  %673 = vmatpush.msrb.mxu3 %v634_v61  ;;  %v748_v9 = vld [vmem:[%s1045_s10 + $0x30] sm:$0xff] (%p1019_p4) }
 0x252   : > { %650 = vst [vmem:[%s1045_s10 + $0x10] sm:$0xff] %v634_v61 }
 0x253   : > { %641 = vst [vmem:[#allocation2] sm:$0xff] %v633_v63  ;;  %674 = vmatpush.msrb.mxu3 %v633_v63  ;;  %v746_v8 = vld [vmem:[%s1045_s10 + $0x28] sm:$0xff] (%p1019_p4) }
 0x254   : > { %649 = vst [vmem:[%s1045_s10 + $0x8] sm:$0xff] %v633_v63 }
 0x255   : > { %640 = vst [vmem:[#allocation2 + $0x30] sm:$0xff] %v632_v0  ;;  %675 = vmatpush.msrb.mxu3 %v632_v0  ;;  %v744_v7 = vld [vmem:[%s1045_s10 + $0x20] sm:$0xff] (%p1019_p4) }
 0x256   : > { %648 = vst [vmem:[%s1045_s10] sm:$0xff] %v632_v0  ;;  %877 = vmatmul.msk.f32.vlgmr.msrb.gmra.mxu3 %vm361_vm0, %v656_v1 }
 0x257   : > { %v742_v6 = vld [vmem:[%s1045_s10 + $0x18] sm:$0xff] (%p1019_p4)  ;;  %745 = vst [vmem:[%s693_s11 + $0x60] sm:$0xff] (%p1019_p4), %v744_v7 }
 0x258   : > { %743 = vst [vmem:[%s693_s11 + $0x48] sm:$0xff] (%p1019_p4), %v742_v6 }
 0x259   : > { %v740_v5 = vld [vmem:[%s1045_s10 + $0x10] sm:$0xff] (%p1019_p4)  ;;  %747 = vst [vmem:[%s693_s11 + $0x78] sm:$0xff] (%p1019_p4), %v746_v8 }
 0x25a   : > { %741 = vst [vmem:[%s693_s11 + $0x30] sm:$0xff] (%p1019_p4), %v740_v5 }
 0x25b   : > { %v738_v4 = vld [vmem:[%s1045_s10 + $0x8] sm:$0xff] (%p1019_p4)  ;;  %749 = vst [vmem:[%s693_s11 + $0x90] sm:$0xff] (%p1019_p4), %v748_v9 }
 0x25c   : > { %739 = vst [vmem:[%s693_s11 + $0x18] sm:$0xff] (%p1019_p4), %v738_v4 }
 0x25d   : > { %v736_v3 = vld [vmem:[%s1045_s10] sm:$0xff] (%p1019_p4)  ;;  %751 = vst [vmem:[%s693_s11 + $0xa8] sm:$0xff] (%p1019_p4), %v750_v10 }
 0x25e   : > { %737 = vst [vmem:[%s693_s11] sm:$0xff] (%p1019_p4), %v736_v3 }
 0x2d6   : > { %691 = sbr.rel (!%p1019_p4) target bundleno = 731 (0x2db), region = 52 }
 0x2d9   : > { %v677_v2 = vpop.f32.mrf.mxu3 }
 0x2da   : > { %680 = vst [vmem:[%s1043_s30] sm:$0xf] %v677_v2 }
 0x2db PF: > { %p15_p9 = scmp.ge.s32.totalorder %s1010_s28, 5   ;;  %s1196_s24 = smov %s950_s25 }
 0x2dc   : > { %s1197_s25 = smov %s1017_s8  ;;  %s1198_s26 = smov %s1010_s28 }
 0x2dd   :  { %17 = sbr.rel (!%p15_p9) target bundleno = 2 (0x2), region = 134 }

</bundles_post_ra>
